<compile_context>
chip_gen: v7x
topology: tpu7x:2x2x1
jax: 0.10.0
libtpu: 0.0.40
codegen_flags: <defaults>
</compile_context>

<pallas_src>
import functools

import jax
import jax.numpy as jnp
import numpy as np
from jax import lax
from jax.experimental import pallas as pl
from jax.experimental.pallas import tpu as pltpu

NEG_SLOPE = 0.2        # PyG GATConv default LeakyReLU negative_slope
MASK_VAL = -1e30       # additive mask value (exp underflows to exactly 0 in f32)


@functools.lru_cache(maxsize=None)
def _vmem_limit_bytes():
    """Generation-aware scoped-VMEM limit (v5e/v6e: ~108 MiB, v7x: ~54 MiB)."""
    try:
        cap = int(pltpu.get_tpu_info().vmem_capacity_bytes)
        lim = int(cap * 0.85)
    except Exception:
        lim = 48 * 1024 * 1024                       # conservative fallback
    return min(max(lim, 32 * 1024 * 1024), 112 * 1024 * 1024)


def _choose_tile(n, d, vmem_limit):
    """Largest dst-row tile (multiple of 16 for bf16 sublane packing) dividing N that
    keeps the double-buffered (TM, N) mask stream + resident bf16 xw inside VMEM."""
    resident = 2 * n * d + 4 * n * 8 + 4 * d          # bf16 xw + f32 scores + bias (rough)
    for t in (2048, 1024, 512, 256, 128, 64, 32, 16):
        if t <= n and n % t == 0:
            streamed = 2 * (t * n * 2) + 2 * (t * d * 4)   # 2x-buffered mask + out tiles
            if resident + streamed <= int(0.7 * vmem_limit):
                return t
    return n                                          # small graphs: one tile


# ---------------------------------------------------------------------------
# Kernel A: per-layer linear transform + fused attention-score matmul
# ---------------------------------------------------------------------------
def _linear_att_kernel(x_ref, w_ref, attmat_ref, xw_ref, a_ref):
    """xw = x @ W (stored bf16); a = xw @ att_mat  (a[:, :H] src scores, a[:, H:] dst)."""
    xw = jnp.dot(x_ref[...], w_ref[...], preferred_element_type=jnp.float32)
    xw_ref[...] = xw.astype(xw_ref.dtype)             # bf16 slab consumed by the GAT kernel
    a_ref[...] = jnp.dot(xw, attmat_ref[...], preferred_element_type=jnp.float32)


def linear_and_scores(x, w, att_mat, *, tile_m, vmem_limit):
    n, f_in = x.shape
    d = w.shape[1]
    two_h = att_mat.shape[1]
    assert n % tile_m == 0
    grid = (n // tile_m,)
    return pl.pallas_call(
        _linear_att_kernel,
        out_shape=(jax.ShapeDtypeStruct((n, d), jnp.bfloat16),
                   jax.ShapeDtypeStruct((n, two_h), jnp.float32)),
        grid=grid,
        in_specs=[pl.BlockSpec((tile_m, f_in), lambda i: (i, 0)),
                  pl.BlockSpec((f_in, d), lambda i: (0, 0)),
                  pl.BlockSpec((d, two_h), lambda i: (0, 0))],
        out_specs=(pl.BlockSpec((tile_m, d), lambda i: (i, 0)),
                   pl.BlockSpec((tile_m, two_h), lambda i: (i, 0))),
        compiler_params=pltpu.CompilerParams(
            dimension_semantics=("parallel",),
            vmem_limit_bytes=vmem_limit),
    )(x, w, att_mat)


# ---------------------------------------------------------------------------
# Kernel B: one GAT layer, tiled over destination rows ("parallel" -> both TCs on v7x)
# ---------------------------------------------------------------------------
def _gat_layer_kernel(xw_ref, a_src_t_ref, a_dst_ref, mask_ref, bias_ref, out_ref,
                      *, heads, out_ch):
    xw = xw_ref[...]                                   # [N, D]  bf16 (all source nodes)
    a_src_t = a_src_t_ref[...]                         # [H, N]  f32
    a_dst = a_dst_ref[...]                             # [TM, H] f32
    mask_add = mask_ref[...].astype(jnp.float32)       # [TM, N] one convert, shared by heads
    bias = bias_ref[...]                               # [1, D]  f32

    outs = []
    for h in range(heads):                             # static unroll over heads
        e = a_dst[:, h:h + 1] + a_src_t[h:h + 1, :]    # [TM, N]  e[i, j] for edge j -> i
        e = jnp.maximum(e, NEG_SLOPE * e)              # LeakyReLU(0.2), slope in (0,1)
        e = e + mask_add                               # additive mask: 0 edge / -1e30 non-edge
        m = jnp.max(e, axis=1, keepdims=True)
        p = jnp.exp(e - m)                             # masked entries underflow to 0
        denom = jnp.sum(p, axis=1, keepdims=True)      # > 0 (self-loops present)
        attn = (p * pl.reciprocal(denom, approx=True)).astype(jnp.bfloat16)
        outs.append(jnp.dot(attn, xw[:, h * out_ch:(h + 1) * out_ch],
                            preferred_element_type=jnp.float32))
    node = jnp.concatenate(outs, axis=1) + bias        # [TM, D]
    out_ref[...] = jnp.maximum(node, 0.0)              # single lane-dense store


def gat_layer(xw, a_src_t, a_dst, mask, bias, *, heads, out_ch, tile_m, vmem_limit):
    n, d = xw.shape
    assert n % tile_m == 0
    grid = (n // tile_m,)
    cost = pl.CostEstimate(
        flops=int(2 * n * n * d + 7 * heads * n * n),
        transcendentals=int(heads * n * n),
        bytes_accessed=int(mask.dtype.itemsize * n * n
                           + xw.dtype.itemsize * n * d * (1 + grid[0])
                           + 4 * n * d))
    kernel = functools.partial(_gat_layer_kernel, heads=heads, out_ch=out_ch)
    return pl.pallas_call(
        kernel,
        out_shape=jax.ShapeDtypeStruct((n, d), jnp.float32),
        grid=grid,
        in_specs=[pl.BlockSpec((n, d), lambda i: (0, 0)),           # xw (all src), bf16
                  pl.BlockSpec((heads, n), lambda i: (0, 0)),       # src scores (row-major)
                  pl.BlockSpec((tile_m, heads), lambda i: (i, 0)),  # dst scores, this tile
                  pl.BlockSpec((tile_m, n), lambda i: (i, 0)),      # additive mask tile (bf16)
                  pl.BlockSpec((1, d), lambda i: (0, 0))],          # bias
        out_specs=pl.BlockSpec((tile_m, d), lambda i: (i, 0)),
        compiler_params=pltpu.CompilerParams(
            dimension_semantics=("parallel",),        # dst tiles shard across TCs (v7x)
            vmem_limit_bytes=vmem_limit),
        cost_estimate=cost,
    )(xw, a_src_t, a_dst, mask, bias)


# ---------------------------------------------------------------------------
# Kernel C: mean readout + projection head (tiny serial accumulator micro-kernel)
# ---------------------------------------------------------------------------
def _pool_proj_kernel(h_ref, pool_ref, w1_ref, b1_ref, w2_ref, b2_ref, out_ref, acc_ref):
    i = pl.program_id(0)

    @pl.when(i == 0)
    def _():
        acc_ref[...] = jnp.zeros_like(acc_ref)

    # pooled[b, :] += sum_{n in tile} pool[n, b] * h[n, :]  (contract dim 0 of both)
    acc_ref[...] = acc_ref[...] + lax.dot_general(
        pool_ref[...], h_ref[...], (((0,), (0,)), ((), ())),
        preferred_element_type=jnp.float32)

    @pl.when(i == pl.num_programs(0) - 1)
    def _():
        hid = jnp.dot(acc_ref[...], w1_ref[...],
                      preferred_element_type=jnp.float32) + b1_ref[...]
        hid = jnp.maximum(hid, 0.0)
        out_ref[...] = jnp.dot(hid, w2_ref[...],
                               preferred_element_type=jnp.float32) + b2_ref[...]


def mean_pool_project(h, pool_t, w1, b1, w2, b2, *, tile_m, vmem_limit):
    n, d = h.shape
    b = pool_t.shape[1]
    h1 = w1.shape[1]
    o = w2.shape[1]
    assert n % tile_m == 0
    grid = (n // tile_m,)
    return pl.pallas_call(
        _pool_proj_kernel,
        out_shape=jax.ShapeDtypeStruct((b, o), jnp.float32),
        grid=grid,
        in_specs=[pl.BlockSpec((tile_m, d), lambda i: (i, 0)),      # node features tile
                  pl.BlockSpec((tile_m, b), lambda i: (i, 0)),      # mean-pool weights [N, B]
                  pl.BlockSpec((d, h1), lambda i: (0, 0)),
                  pl.BlockSpec((1, h1), lambda i: (0, 0)),
                  pl.BlockSpec((h1, o), lambda i: (0, 0)),
                  pl.BlockSpec((1, o), lambda i: (0, 0))],
        out_specs=pl.BlockSpec((b, o), lambda i: (0, 0)),           # resident output
        scratch_shapes=[pltpu.VMEM((b, d), jnp.float32)],           # pooled accumulator
        compiler_params=pltpu.CompilerParams(
            dimension_semantics=("arbitrary",),       # serial accumulation over node tiles
            vmem_limit_bytes=vmem_limit),
    )(h, pool_t, w1, b1, w2, b2)


# ---------------------------------------------------------------------------
# Full forward
# ---------------------------------------------------------------------------
def gnn_encoder_gat_forward(x, mask_add, pool_t, params, *, tile_m=None):
    """Stacked GAT layers -> mean pool -> projection head.

    x:        [N, F_in] f32 node features
    mask_add: [N, N]    bf16 additive attention mask: 0 for edges (incl. self-loops),
                        -1e30 otherwise; mask_add[dst, src]
    pool_t:   [N, B]    f32, pool_t[n, b] = 1/count_b if batch[n] == b else 0
    """
    n = x.shape[0]
    vmem_limit = _vmem_limit_bytes()
    layers = params["gat_layers"]
    d_last = layers[-1]["heads"] * layers[-1]["out_ch"]
    tm = tile_m if tile_m is not None else _choose_tile(n, d_last, vmem_limit)

    h = x
    for layer in layers:
        heads, out_ch = layer["heads"], layer["out_ch"]
        xw, a = linear_and_scores(h, layer["w"], layer["att_mat"],
                                  tile_m=tm, vmem_limit=vmem_limit)
        # layout plumbing only (tiny arrays): src scores row-major once per layer
        a_src_t = jnp.transpose(a[:, :heads])          # [heads, N]
        a_dst = a[:, heads:]                           # [N, heads]
        h = gat_layer(xw, a_src_t, a_dst, mask_add, layer["bias"],
                      heads=heads, out_ch=out_ch, tile_m=tm, vmem_limit=vmem_limit)
        # dropout: identity (eval mode)  # TODO(synk): training-mode dropout not implemented
    return mean_pool_project(h, pool_t,
                             params["proj_w1"], params["proj_b1"],
                             params["proj_w2"], params["proj_b2"],
                             tile_m=tm, vmem_limit=vmem_limit)


# ---------------------------------------------------------------------------
# Parameter / input construction
# ---------------------------------------------------------------------------
def _build_att_mat(att_src, att_dst):
    """Block-diagonal [heads*out_ch, 2*heads] so a = xw @ att_mat gives all head scores."""
    heads, out_ch = att_src.shape
    d = heads * out_ch
    eye = jnp.eye(heads, dtype=jnp.float32)
    src_blk = (att_src[:, :, None] * eye[:, None, :]).reshape(d, heads)
    dst_blk = (att_dst[:, :, None] * eye[:, None, :]).reshape(d, heads)
    return jnp.concatenate([src_blk, dst_blk], axis=1)


def init_params(key, input_dim, hidden_dim, output_dim, num_layers, heads):
    params = {"gat_layers": []}
    dims_in = [input_dim] + [hidden_dim * heads] * (num_layers - 1)
    for l in range(num_layers):
        key, k1, k2, k3, k4 = jax.random.split(key, 5)
        f_in = dims_in[l]
        att_src = 0.1 * jax.random.normal(k2, (heads, hidden_dim), jnp.float32)
        att_dst = 0.1 * jax.random.normal(k3, (heads, hidden_dim), jnp.float32)
        params["gat_layers"].append({
            "w": 0.1 * jax.random.normal(k1, (f_in, heads * hidden_dim), jnp.float32),
            "att_src": att_src,
            "att_dst": att_dst,
            "att_mat": _build_att_mat(att_src, att_dst),
            "bias": 0.1 * jax.random.normal(k4, (1, heads * hidden_dim), jnp.float32),
            "heads": heads,
            "out_ch": hidden_dim,
        })
    key, k1, k2, k3, k4 = jax.random.split(key, 5)
    d_pool = heads * hidden_dim   # readout='mean'
    params["proj_w1"] = 0.1 * jax.random.normal(k1, (d_pool, hidden_dim), jnp.float32)
    params["proj_b1"] = 0.1 * jax.random.normal(k2, (1, hidden_dim), jnp.float32)
    params["proj_w2"] = 0.1 * jax.random.normal(k3, (hidden_dim, output_dim), jnp.float32)
    params["proj_b2"] = 0.1 * jax.random.normal(k4, (1, output_dim), jnp.float32)
    return params


def build_graph(num_nodes_per_graph, num_graphs):
    """Bidirectional ring graphs; returns edge_index [2, E], batch [N]."""
    src, dst = [], []
    for g in range(num_graphs):
        base = g * num_nodes_per_graph
        for i in range(num_nodes_per_graph):
            j = (i + 1) % num_nodes_per_graph
            src += [base + i, base + j]
            dst += [base + j, base + i]
    edge_index = np.stack([np.array(src), np.array(dst)], axis=0).astype(np.int32)
    batch = np.repeat(np.arange(num_graphs), num_nodes_per_graph).astype(np.int32)
    return edge_index, batch


def edge_index_to_adj(edge_index, num_nodes):
    adj = np.zeros((num_nodes, num_nodes), dtype=np.float32)
    adj[edge_index[1], edge_index[0]] = 1.0            # adj[dst, src]
    np.fill_diagonal(adj, 1.0)                         # add_self_loops=True (PyG default)
    return jnp.asarray(adj)


def adj_to_additive_mask(adj_f32):
    """bf16 additive mask: 0 where there is an edge, -1e30 elsewhere."""
    return jnp.where(adj_f32 > 0, 0.0, MASK_VAL).astype(jnp.bfloat16)


def batch_to_pool_matrix_t(batch, num_graphs):
    onehot = (batch[:, None] == np.arange(num_graphs)[None, :]).astype(np.float32)  # [N, B]
    counts = onehot.sum(axis=0, keepdims=True)
    return jnp.asarray(onehot / counts)                # mean pool weights, node-major


# ---------------------------------------------------------------------------
# Pure-JAX reference (f32) for a correctness sanity check
# ---------------------------------------------------------------------------
def reference_forward(x, adj_f32, pool_bn, params):
    h = x
    for layer in params["gat_layers"]:
        heads, c = layer["heads"], layer["out_ch"]
        xw = h @ layer["w"]
        outs = []
        for hh in range(heads):
            xw_h = xw[:, hh * c:(hh + 1) * c]
            a_src = jnp.sum(xw_h * layer["att_src"][hh][None, :], axis=1)
            a_dst = jnp.sum(xw_h * layer["att_dst"][hh][None, :], axis=1)
            e = a_dst[:, None] + a_src[None, :]
            e = jnp.where(e > 0, e, NEG_SLOPE * e)
            e = jnp.where(adj_f32 > 0, e, -jnp.inf)
            attn = jax.nn.softmax(e, axis=1)
            outs.append(attn @ xw_h)
        h = jnp.maximum(jnp.concatenate(outs, axis=1) + layer["bias"], 0.0)
    pooled = pool_bn @ h
    hid = jnp.maximum(pooled @ params["proj_w1"] + params["proj_b1"], 0.0)
    return hid @ params["proj_w2"] + params["proj_b2"]


# ---------------------------------------------------------------------------
if __name__ == "__main__":
    input_dim, hidden_dim, output_dim = 8, 8, 16
    num_layers, heads = 2, 4
    num_graphs, nodes_per_graph = 2, 16
    num_nodes = num_graphs * nodes_per_graph
    tile_m = 16   # 2 destination tiles -> exercises the grid + pool accumulator paths

    key = jax.random.PRNGKey(0)
    key, kx, kp = jax.random.split(key, 3)

    x = jax.random.normal(kx, (num_nodes, input_dim), jnp.float32)
    edge_index, batch = build_graph(nodes_per_graph, num_graphs)
    adj_f32 = edge_index_to_adj(edge_index, num_nodes)
    mask_add = adj_to_additive_mask(adj_f32)           # bf16 additive mask (half the N^2 bytes)
    pool_t = batch_to_pool_matrix_t(batch, num_graphs)

    params = init_params(kp, input_dim, hidden_dim, output_dim, num_layers, heads)

    out = gnn_encoder_gat_forward(x, mask_add, pool_t, params, tile_m=tile_m)
    out = jax.block_until_ready(out)
    assert out.shape == (num_graphs, output_dim)
    assert bool(jnp.all(jnp.isfinite(out)))

    ref = reference_forward(x, adj_f32, jnp.transpose(pool_t), params)
    assert bool(jnp.allclose(out, ref, rtol=2e-2, atol=2e-2)), (out, ref)

    print("KERNEL_OK")
</pallas_src>

<mosaic_0001>
module attributes {stable_mosaic.version = 11 : i64} {
  func.func @_linear_att_kernel(%arg0: i32, %arg1: memref<16x8xf32, #tpu.memory_space<vmem>>, %arg2: memref<8x32xf32, #tpu.memory_space<vmem>>, %arg3: memref<32x8xf32, #tpu.memory_space<vmem>>, %arg4: memref<16x32xbf16, #tpu.memory_space<vmem>>, %arg5: memref<16x8xf32, #tpu.memory_space<vmem>>) attributes {dimension_semantics = [#tpu.dimension_semantics<parallel>], iteration_bounds = array<i64: 2>, scalar_prefetch = 0 : i64, scratch_operands = 0 : i64, tpu.core_type = #tpu.core_type<tc>, window_params = [{transform_indices = @transform_0, window_bounds = array<i64: 16, 8>}, {pipeline_mode = #tpu.pipeline_mode<synchronous>, transform_indices = @transform_1, window_bounds = array<i64: 8, 32>}, {pipeline_mode = #tpu.pipeline_mode<synchronous>, transform_indices = @transform_2, window_bounds = array<i64: 32, 8>}, {transform_indices = @transform_3, window_bounds = array<i64: 16, 32>}, {transform_indices = @transform_4, window_bounds = array<i64: 16, 8>}]} {
    %c0 = arith.constant 0 : index
    %c0_0 = arith.constant 0 : index
    %0 = vector.load %arg1[%c0, %c0_0] : memref<16x8xf32, #tpu.memory_space<vmem>>, vector<16x8xf32>
    %c0_1 = arith.constant 0 : index
    %c0_2 = arith.constant 0 : index
    %1 = vector.load %arg2[%c0_1, %c0_2] : memref<8x32xf32, #tpu.memory_space<vmem>>, vector<8x32xf32>
    %cst = arith.constant dense<0.000000e+00> : vector<16x32xf32>
    %2 = tpu.matmul %0, %1, %cst {dimension_numbers = #tpu.dot_dimension_numbers<[1], [0], [0], [1], [0, 0, 1, 1], [], []>} : vector<16x8xf32>, vector<8x32xf32>, vector<16x32xf32> -> vector<16x32xf32>
    %3 = arith.truncf %2 : vector<16x32xf32> to vector<16x32xbf16>
    %c0_3 = arith.constant 0 : index
    %c0_4 = arith.constant 0 : index
    %4 = vector.load %arg4[%c0_3, %c0_4] : memref<16x32xbf16, #tpu.memory_space<vmem>>, vector<16x32xbf16>
    tpu.vector_store %arg4[%c0_3, %c0_4], %3 {strides = array<i32>} : memref<16x32xbf16, #tpu.memory_space<vmem>>, vector<16x32xbf16>,
    %c0_5 = arith.constant 0 : index
    %c0_6 = arith.constant 0 : index
    %5 = vector.load %arg3[%c0_5, %c0_6] : memref<32x8xf32, #tpu.memory_space<vmem>>, vector<32x8xf32>
    %cst_7 = arith.constant dense<0.000000e+00> : vector<16x8xf32>
    %6 = tpu.matmul %2, %5, %cst_7 {dimension_numbers = #tpu.dot_dimension_numbers<[1], [0], [0], [1], [0, 0, 1, 1], [], []>} : vector<16x32xf32>, vector<32x8xf32>, vector<16x8xf32> -> vector<16x8xf32>
    %c0_8 = arith.constant 0 : index
    %c0_9 = arith.constant 0 : index
    %7 = vector.load %arg5[%c0_8, %c0_9] : memref<16x8xf32, #tpu.memory_space<vmem>>, vector<16x8xf32>
    tpu.vector_store %arg5[%c0_8, %c0_9], %6 {strides = array<i32>} : memref<16x8xf32, #tpu.memory_space<vmem>>, vector<16x8xf32>,
    return
  }
  func.func @transform_0(%arg0: i32) -> (i32, i32) {
    %c0_i32 = arith.constant 0 : i32
    %c0_i32_0 = arith.constant 0 : i32
    return %arg0, %c0_i32 : i32, i32
  }
  func.func @transform_1(%arg0: i32) -> (i32, i32) {
    %c0_i32 = arith.constant 0 : i32
    %c0_i32_0 = arith.constant 0 : i32
    %c0_i32_1 = arith.constant 0 : i32
    return %c0_i32, %c0_i32_0 : i32, i32
  }
  func.func @transform_2(%arg0: i32) -> (i32, i32) {
    %c0_i32 = arith.constant 0 : i32
    %c0_i32_0 = arith.constant 0 : i32
    %c0_i32_1 = arith.constant 0 : i32
    return %c0_i32, %c0_i32_0 : i32, i32
  }
  func.func @transform_3(%arg0: i32) -> (i32, i32) {
    %c0_i32 = arith.constant 0 : i32
    %c0_i32_0 = arith.constant 0 : i32
    return %arg0, %c0_i32 : i32, i32
  }
  func.func @transform_4(%arg0: i32) -> (i32, i32) {
    %c0_i32 = arith.constant 0 : i32
    %c0_i32_0 = arith.constant 0 : i32
    return %arg0, %c0_i32 : i32, i32
  }
}

</mosaic_0001>

<bundles_post_ra>
// kernel: tpu_custom_call.1
= control target key start
LH: loop header
LB: loop body
LE: loop exit
PB: predicated region body
PF: predicated region fallthrough
CT: control target
= control target key end

     0   :  { %10 = vsyncpa [#allocation3], 0  ;;  %s827_s0 = inlined_call_operand.vmem [shape: f32[32,8], index: 0, kind: input, shape index: {}]   ;;  %s828_s1 = inlined_call_operand.vmem [shape: f32[8,32], index: 1, kind: input, shape index: {}]   ;;  %s829_s2 = inlined_call_operand.vmem [shape: f32[32,8], index: 2, kind: input, shape index: {}]   ;;  %s830_s3 = inlined_call_operand.hbm [shape: bf16[32,32], index: 3, kind: output, shape index: {0}]   ;;  %s831_s4 = inlined_call_operand.vmem [shape: f32[32,8], index: 4, kind: output, shape index: {1}]  }
   0x1   :  { %12 = vsyncpa [#allocation3 + $0x1], 0  ;;  %s696_s15 = smov 0   ;;  %s698_s16 = smov 0  }
   0x2   :  { %s700_s17 = smov 0   ;;  %s702_s18 = smov 0  }
   0x3 LB: > { %s717_s19 = sadd.s32 4294967295, %s666_s18   ;;  %s507_s20 = sadd.s32 4294967294, %s666_s18   ;;  %s666_s18 = sphi %s702_s18, %s837_s18   ;;  %s662_s17 = sphi %s700_s17, %s836_s17   ;;  %s658_s16 = sphi %s698_s16, %s835_s16   ;;  %s654_s15 = sphi %s696_s15, %s834_s15  }
   0x4   : > { %s721_s21 = sadd.s32 1, %s666_s18   ;;  %s93_s22 = sadd.s32 1, %s662_s17 }
   0x5   : > { %s90_s23 = ssub.s32 %s666_s18, %s721_s21  ;;  %p103_p0 = scmp.ne.s32.totalorder %s662_s17, %s658_s16 }
   0x6   : > { %p91_p1 = scmp.eq.s32.totalorder %s90_s23, 0  ;;  %p104_p2 = scmp.eq.s32.totalorder %s717_s19, 1 }
   0x7   : > { %p109_p3 = scmp.ne.s32.totalorder %s658_s16, %s654_s15  ;;  %p110_p4 = scmp.eq.s32.totalorder %s507_s20, 1 }
   0x8   : > { %s732_s24 = scalar_select %p91_p1, %s662_s17, %s93_s22  }
   0x9   : > { %p734_p5 = por %p104_p2, %p103_p0  ;;  %p738_p6 = por %p110_p4, %p109_p3 }
   0xa   : > { %p510_p7 = scmp.ge.s32.totalorder %s666_s18, 1  ;;  %p169_p8 = scmp.lt.s32.totalorder %s666_s18, 3 }
   0xc   : > { %p170_p9 = pnand %p510_p7, %p169_p8 }
   0xd   : > { %v215_v0 = vld [vmem:[%s828_s1] sm:$0xff] (!%p170_p9)  ;;  %s512_s29 = sshll.u32 (!%p170_p9), %s717_s19, 1  ;;  %v310_v2 = vld [vmem:[%s829_s2 + $0x8] sm:$0xff] (!%p170_p9)  ;;  %v311_v4 = vld [vmem:[%s829_s2 + $0x10] sm:$0xff] (!%p170_p9)  ;;  %vm216_vm0 = vcmask (!%p170_p9), 64512   ;;  %s190_s22 = sand.u32 (!%p170_p9), 1, %s658_s16  }
   0xe   : > { %173 = sbr.rel (%p170_p9) target bundleno = 454 (0x1c6), region = 32  ;;  %v309_v1 = vld [vmem:[%s829_s2] sm:$0xff] (!%p170_p9)  ;;  %539 = vmatprep.subr.mxu0 (!%p170_p9), %v215_v0  ;;  %p201_p10 = scmp.lt.s32.totalorder (!%p170_p9), %s512_s29, 3  ;;  %v312_v5 = vld [vmem:[%s829_s2 + $0x18] sm:$0xff] (!%p170_p9)  ;;  %vm313_vm1 = vcmask (!%p170_p9), 261120   ;;  %vm306_vm2 = vcmask (!%p170_p9), 257024  }
   0xf   : > { %v555_v3 = vpack.c.bf16 (!%p170_p9), %v310_v2, %v309_v1  ;;  %540 = vmatpush3.msra.mxu0 (!%p170_p9), %v215_v0  ;;  %v559_v6 = vpack.c.bf16 (!%p170_p9), %v312_v5, %v311_v4  ;;  %s511_s23 = sshll.u32 (!%p170_p9), %s190_s22, 3  ;;  %s529_s30 = sshll.u32 (!%p170_p9), %s717_s19, 7 }
  0x10   : > { %s192_s27 = scalar_lea.vmem (!%p170_p9), [#allocation2], %s511_s23  ;;  %s777_s7 = scalar_lea.hbm (!%p170_p9), %s830_s3, %s529_s30 }
  0x11   : > { %556 = vmatprep.subr.bf16.mxu1 (!%p170_p9), %v555_v3  ;;  %s416_s28 = sshll.u32 (!%p170_p9), %s192_s27, 4  ;;  %s779_s8 = scalar_lea.sflag (!%p170_p9), [#allocation3], %s190_s22  ;;  %s771_s28 = int_to_ptr.vmem [resolvable:$true] %s416_s28 }
  0x12   : > { %558 = vmatpush3.bf16.msra.mxu1 (!%p170_p9), %v555_v3  ;;  %s604_s9 = scalar_lea.vmem (!%p170_p9), %s771_s28, 128  ;;  %s668_s10 = smov (!%p170_p9), [#allocation2]  }
  0x13   : > { %560 = vmatprep.subr.bf16.mxu1 (!%p170_p9), %v559_v6  ;;  %p605_p11 = scmp.ne.s32.totalorder (!%p170_p9), %s771_s28, %s604_s9  ;;  %s608_s11 = sshll.u32 (!%p170_p9), %s668_s10, 4  ;;  %s609_s11 = int_to_ptr.vmem [resolvable:$false] %s608_s11 }
  0x14   : > { %s610_s13 = scalar_lea.vmem (!%p170_p9), %s609_s11, 256  ;;  %p611_p0 = scmp.lt.s32.totalorder (!%p170_p9), %s771_s28, %s609_s11 }
  0x15   : > { %s839_s29 = smov (!%p201_p10, %s512_s29), 3  ;;  %p606_p12 = pnand %p605_p11, %p734_p5 }
  0x16   : > { %s513_s12 = sshll.u32 %s839_s29, 3  ;;  %562 = vmatpush3.bf16.msra.mxu1 %v559_v6  ;;  %p612_p1 = scmp.lt.s32.totalorder %s610_s13, %s604_s9 }
  0x17   : > { %s204_s20 = scalar_lea.vmem %s827_s0, %s513_s12  ;;  %p607_p13 = pneg %p606_p12 }
  0x18   : > { %v213_v7 = vld [vmem:[%s204_s20] sm:$0xff]  ;;  %v214_v8 = vld [vmem:[%s204_s20 + $0x8] sm:$0xff]  ;;  %p613_p2 = por %p612_p1, %p611_p0 }
  0x19   : > { %541 = vmatprep.mubr.msk.f32.mxu0 %vm216_vm0, %v213_v7 }
  0x1a   : > { %542 = vmatmul.mubr.msk.f32.vlgmr.msra.gmra.mrb[0].mxu0 %vm216_vm0, %v214_v8  ;;  %p614_p3 = pnand %p613_p2, %p607_p13 }
  0xed   : > { %v543_v9 = vpop.f32.mrb[0].mxu0 }
  0xee   : > { %v528_v10 = vpack.c.bf16 %v543_v9, %v543_v9  ;;  %v289_v11 = vpop.f32.mrb[1].mxu0 }
  0xef   : > { %v527_v12 = vpack.c.bf16 %v289_v11, %v289_v11  ;;  %552 = vmatprep.mubr.msk.f32.mxu1 %vm313_vm1, %v289_v11 }
  0xf0   : > { %308 = vst.msk [vmem:[%s192_s27 + $0x4] sm:$0xf] %vm306_vm2, %v528_v10  ;;  %553 = vmatmul.mubr.msk.f32.vlgmr.msra.gmra.mrb[0].mxu1 %vm313_vm1, %v543_v9 }
  0xf1   : > { %307 = vst.msk [vmem:[%s192_s27] sm:$0xf] %vm306_vm2, %v527_v12 }
  0xf2   : > { %617 = shalt.err (!%p614_p3)
}
  0xf3   : > { %s618_s19 = scalar_lea.hbm %s777_s7, 128  ;;  %s622_s22 = scalar_lea.hbm %s830_s3, 256 }
  0xf4   : > { %p619_p4 = scmp.ne.s32.totalorder %s777_s7, %s618_s19  ;;  %p623_p9 = scmp.lt.u32.totalorder %s777_s7, %s830_s3 }
  0xf5   : > { %p624_p10 = scmp.lt.u32.totalorder %s622_s22, %s618_s19  ;;  %p626_p12 = scmp.lt.u32.totalorder %s618_s19, %s777_s7 }
  0xf6   : > { %p620_p7 = pnand %p619_p4, %p734_p5 }
  0xf7   : > { %p625_p11 = por %p624_p10, %p623_p9 }
  0xf8   : > { %p621_p8 = pneg %p620_p7 }
  0xf9   : > { %p627_p13 = por %p626_p12, %p625_p11 }
  0xfb   : > { %p628_p0 = pnand %p627_p13, %p621_p8 }
  0xfd   : > { %631 = shalt.err (!%p628_p0)
}
  0xfe   : > { %s669_s30 = smov 64   ;;  %s670_s5 = smov 4  }
  0xff   : > { %563 = dma.vmem_to_hbm [thread:$0]  (%p734_p5), %s771_s28, 128, %s777_s7, %s779_s8, %s669_s30, %s669_s30, %s670_s5  }
 0x100   : > { %s211_s10 = scalar_lea.vmem %s831_s4, %s513_s12 }
 0x1c3   : > { %v554_v13 = vpop.f32.mrb[0].mxu1 }
 0x1c4   : > { %v386_v14 = vpop.f32.mrb[1].mxu1  ;;  %396 = vst.msk [vmem:[%s211_s10 + $0x8] sm:$0xff] %vm216_vm0, %v554_v13 }
 0x1c5   : > { %395 = vst.msk [vmem:[%s211_s10] sm:$0xff] %vm216_vm0, %v386_v14 }
 0x1c6 PF: > { %p569_p1 = scmp.ge.s32.totalorder %s666_s18, 2  ;;  %s435_s11 = sand.u32 1, %s654_s15  }
 0x1c7   : > { %s436_s25 = scalar_lea.sflag [#allocation3], %s435_s11 }
 0x1c8   : > { %p566_p2 = pnand %p569_p1, %p738_p6 }
 0x1ca   : > { %649 = dma.done.wait (!%p566_p2), %s436_s25, 128  }
 0x1cb   : > { %651 = vsyncadd (!%p566_p2), %s436_s25, 4294967168  ;;  %p15_p5 = scmp.ge.s32.totalorder %s721_s21, 4   ;;  %s834_s15 = smov %s658_s16 }
 0x1cc   : > { %s835_s16 = smov %s662_s17  ;;  %s836_s17 = smov %s732_s24 }
 0x1cd   : > { %s837_s18 = smov %s721_s21  ;;  %17 = sbr.rel (!%p15_p5) target bundleno = 3 (0x3), region = 79 }
 0x1d4   :  { %449 = vsyncpa [#allocation3], 1 }
 0x1d5   :  { %451 = vsyncpa [#allocation3 + $0x1], 1 }

</bundles_post_ra>
